<compile_context>
chip_gen: v5e
topology: v5e:2x2
jax: 0.10.0
libtpu: 0.0.40
codegen_flags: <defaults>
</compile_context>

<pallas_src>
import functools

import jax
import jax.numpy as jnp
from jax.experimental import pallas as pl
from jax.experimental.pallas import tpu as pltpu


def _round_up(x, m):
    return (x + m - 1) // m * m


# ----------------------------------------------------------------------------
# Fused kernel (per batch element n), all tensors in (C, HW) layout:
#   x1  = relu(w1 @ x + b1)                   (1x1 conv + BN + ReLU)
#   att = sigmoid(wl2 @ relu(wl1 @ pool(x1))) (SE MLP)
#   y   = x1 * att
#   c   = sum over 9 taps of w2[t] @ shift(y) (3x3 conv, pad=1, + BN)
#   out = relu(y + c + b2)
# ----------------------------------------------------------------------------
def _fused_kernel(H, W, PAD, x_ref, w1_ref, b1_ref, wl1_ref, wl2_ref,
                  w2_ref, b2_ref, wmask_ref, out_ref, ypad_ref):
    HW = H * W
    Cout = w1_ref.shape[0]
    inv_hw = 1.0 / float(HW)
    f32 = jnp.float32

    # --- 1x1 conv (BN scale pre-folded into w1) + bias + ReLU ----------------
    x = x_ref[0]                                                   # (Cin, HW)
    x1 = jnp.maximum(
        jnp.dot(w1_ref[...], x, preferred_element_type=f32) + b1_ref[...],
        0.0)                                                       # (Cout, HW)

    # --- global average pool (lane reduce, constant scale) + SE MLP ----------
    pool = jnp.sum(x1, axis=1, keepdims=True) * inv_hw             # (Cout, 1)
    h = jnp.maximum(jnp.dot(wl1_ref[...], pool, preferred_element_type=f32), 0.0)
    a = jnp.dot(wl2_ref[...], h, preferred_element_type=f32)       # (Cout, 1)
    att = 1.0 / (1.0 + jnp.exp(-a))

    # --- channel-attention scaling; park y in the lane-padded scratch --------
    # Layout: [PAD zeros | y (HW) | PAD zeros]; interior store is 128-aligned.
    ypad_ref[:, :PAD] = jnp.zeros((Cout, PAD), f32)
    ypad_ref[:, PAD + HW:] = jnp.zeros((Cout, PAD), f32)
    ypad_ref[:, PAD:PAD + HW] = x1 * att

    # --- 3x3 SAME conv as 9 accumulated shifted matmuls ----------------------
    # shifted[c, p] = y[c, p + dh*W + dw] (zeros outside the image via the
    # scratch borders); row-wrap for the +-1 column taps is killed by wmask.
    m_dw_neg = wmask_ref[0:1, :]     # 0 where output col == 0      (dw = -1)
    m_dw_pos = wmask_ref[1:2, :]     # 0 where output col == W - 1  (dw = +1)

    conv = None
    for t in range(9):
        dh, dw = t // 3 - 1, t % 3 - 1
        d = dh * W + dw
        shifted = ypad_ref[:, PAD + d:PAD + d + HW]                # (Cout, HW)
        if dw == -1:
            shifted = shifted * m_dw_neg
        elif dw == 1:
            shifted = shifted * m_dw_pos
        part = jnp.dot(w2_ref[t], shifted, preferred_element_type=f32)
        conv = part if conv is None else conv + part               # (Cout, HW)

    # --- residual (re-read y from scratch) + folded-BN bias + ReLU -----------
    y = ypad_ref[:, PAD:PAD + HW]
    out_ref[0] = jnp.maximum(y + conv + b2_ref[...], 0.0)


# ----------------------------------------------------------------------------
# Wrapper (NCHW in / NCHW out, like the PyTorch module). No transposes and no
# channel padding in HBM: NCHW -> (N, C, H*W) is a pure reshape.
# ----------------------------------------------------------------------------
def channel_attention(x_nchw, params):
    N, Cin, H, W = x_nchw.shape
    Cout = params["w1"].shape[1]
    Cmid = params["wl1"].shape[1]
    HW = H * W
    PAD = _round_up(W + 1, 128)          # lane-aligned spatial pad for the 3x3
    f32 = jnp.float32

    s1 = params["s1"].reshape(-1)
    b1 = params["b1"].reshape(-1)
    s2 = params["s2"].reshape(-1)
    b2 = params["b2"].reshape(-1)

    # --- weight prep (glue): fold BN scales, kernel layouts (tiny arrays) ----
    w1k = (jnp.transpose(params["w1"]) * s1[:, None]).astype(f32)   # (Cout, Cin)
    b1k = b1.reshape(Cout, 1).astype(f32)
    wl1k = jnp.transpose(params["wl1"]).astype(f32)                 # (Cmid, Cout)
    wl2k = jnp.transpose(params["wl2"]).astype(f32)                 # (Cout, Cmid)
    w2f = params["w2"] * s2[None, None, None, :]                    # (3,3,Ci,Co) HWIO
    w2k = jnp.transpose(w2f.reshape(9, Cout, Cout), (0, 2, 1)).astype(f32)  # (9,Co,Ci)
    b2k = b2.reshape(Cout, 1).astype(f32)

    # Row-wrap masks (f32 0/1 constants) for the dw = -1 / +1 taps.
    col = jnp.arange(HW, dtype=jnp.int32) % W
    wmask = jnp.stack([(col != 0).astype(f32),
                       (col != W - 1).astype(f32)], axis=0)         # (2, HW)

    # --- input: NCHW -> (N, Cin, HW), true channel width ----------------------
    x_chw = x_nchw.reshape(N, Cin, HW).astype(f32)

    kernel = functools.partial(_fused_kernel, H, W, PAD)

    out = pl.pallas_call(
        kernel,
        out_shape=jax.ShapeDtypeStruct((N, Cout, HW), f32),
        grid=(N,),
        in_specs=[
            pl.BlockSpec((1, Cin, HW), lambda n: (n, 0, 0)),    # x
            pl.BlockSpec((Cout, Cin), lambda n: (0, 0)),        # w1 (folded)
            pl.BlockSpec((Cout, 1), lambda n: (0, 0)),          # b1
            pl.BlockSpec((Cmid, Cout), lambda n: (0, 0)),       # wl1
            pl.BlockSpec((Cout, Cmid), lambda n: (0, 0)),       # wl2
            pl.BlockSpec((9, Cout, Cout), lambda n: (0, 0, 0)), # w2 (folded, per-tap)
            pl.BlockSpec((Cout, 1), lambda n: (0, 0)),          # b2
            pl.BlockSpec((2, HW), lambda n: (0, 0)),            # row-wrap masks
        ],
        out_specs=pl.BlockSpec((1, Cout, HW), lambda n: (n, 0, 0)),
        scratch_shapes=[pltpu.VMEM((Cout, 2 * PAD + HW), f32)], # lane-padded y
        compiler_params=pltpu.CompilerParams(
            dimension_semantics=("parallel",),                  # batch across TCs
            vmem_limit_bytes=32 * 1024 * 1024),
    )(x_chw, w1k, b1k, wl1k, wl2k, w2k, b2k, wmask)

    return out.reshape(N, Cout, H, W)


# ----------------------------------------------------------------------------
# Deterministic parameter construction (PyTorch layouts -> reference layouts)
# ----------------------------------------------------------------------------
def make_params(key, in_channel, out_channel, eps=1e-5):
    ks = jax.random.split(key, 12)

    def bn_fold(kg, kb, km, kv, c):
        gamma = jax.random.uniform(kg, (c,), jnp.float32, 0.5, 1.5)
        beta = 0.1 * jax.random.normal(kb, (c,), jnp.float32)
        mean = 0.1 * jax.random.normal(km, (c,), jnp.float32)
        var = jax.random.uniform(kv, (c,), jnp.float32, 0.5, 1.5)
        s = gamma / jnp.sqrt(var + eps)
        b = beta - mean * s
        return s.reshape(1, c), b.reshape(1, c)

    # conv1: PyTorch (Cout, Cin, 1, 1)  ->  (Cin, Cout)
    w1_pt = 0.2 * jax.random.normal(ks[0], (out_channel, in_channel, 1, 1), jnp.float32)
    w1 = jnp.transpose(w1_pt[:, :, 0, 0], (1, 0))
    s1, b1 = bn_fold(ks[1], ks[2], ks[3], ks[4], out_channel)

    # linear1: PyTorch (Cout//4, Cout) -> (Cout, Cout//4); linear2 likewise
    wl1_pt = 0.3 * jax.random.normal(ks[5], (out_channel // 4, out_channel), jnp.float32)
    wl2_pt = 0.3 * jax.random.normal(ks[6], (out_channel, out_channel // 4), jnp.float32)
    wl1 = jnp.transpose(wl1_pt)
    wl2 = jnp.transpose(wl2_pt)

    # conv2: PyTorch (Cout, Cout, 3, 3) -> HWIO (3, 3, Cout, Cout)
    w2_pt = 0.1 * jax.random.normal(ks[7], (out_channel, out_channel, 3, 3), jnp.float32)
    w2 = jnp.transpose(w2_pt, (2, 3, 1, 0))
    s2, b2 = bn_fold(ks[8], ks[9], ks[10], ks[11], out_channel)

    return {"w1": w1, "s1": s1, "b1": b1,
            "wl1": wl1, "wl2": wl2,
            "w2": w2, "s2": s2, "b2": b2}


# ----------------------------------------------------------------------------
# Pure-JAX reference (independent path: unfolded BN, lax.conv for the 3x3)
# ----------------------------------------------------------------------------
def reference(x_nchw, params):
    x = jnp.transpose(x_nchw, (0, 2, 3, 1)).astype(jnp.float32)       # NHWC
    x1 = jnp.einsum("nhwc,co->nhwo", x, params["w1"])
    x1 = jnp.maximum(x1 * params["s1"][0] + params["b1"][0], 0.0)
    pool = jnp.mean(x1, axis=(1, 2))                                  # (N, Cout)
    h = jnp.maximum(pool @ params["wl1"], 0.0)
    att = jax.nn.sigmoid(h @ params["wl2"])
    y = x1 * att[:, None, None, :]
    conv2 = jax.lax.conv_general_dilated(
        y, params["w2"], (1, 1), "SAME",
        dimension_numbers=("NHWC", "HWIO", "NHWC"))
    conv2 = conv2 * params["s2"][0] + params["b2"][0]
    out = jnp.maximum(y + conv2, 0.0)
    return jnp.transpose(out, (0, 3, 1, 2))                           # NCHW


if __name__ == "__main__":
    N, C_IN, C_OUT, H, W = 2, 4, 8, 16, 16

    key = jax.random.PRNGKey(0)
    k_x, k_p = jax.random.split(key)
    x = jax.random.normal(k_x, (N, C_IN, H, W), jnp.float32)
    params = make_params(k_p, C_IN, C_OUT)

    out = jax.block_until_ready(channel_attention(x, params))
    ref = jax.block_until_ready(reference(x, params))

    assert out.shape == (N, C_OUT, H, W), out.shape
    assert jnp.allclose(out, ref, atol=1e-4, rtol=1e-4), \
        f"max abs err {jnp.max(jnp.abs(out - ref))}"

    print("KERNEL_OK")
</pallas_src>

<mosaic_0001>
module attributes {stable_mosaic.version = 11 : i64} {
  func.func @_fused_kernel(%arg0: i32, %arg1: memref<1x4x256xf32, #tpu.memory_space<vmem>>, %arg2: memref<8x4xf32, #tpu.memory_space<vmem>>, %arg3: memref<8x1xf32, #tpu.memory_space<vmem>>, %arg4: memref<2x8xf32, #tpu.memory_space<vmem>>, %arg5: memref<8x2xf32, #tpu.memory_space<vmem>>, %arg6: memref<9x8x8xf32, #tpu.memory_space<vmem>>, %arg7: memref<8x1xf32, #tpu.memory_space<vmem>>, %arg8: memref<2x256xf32, #tpu.memory_space<vmem>>, %arg9: memref<1x8x256xf32, #tpu.memory_space<vmem>>, %arg10: memref<8x512xf32, #tpu.memory_space<vmem>>) attributes {dimension_semantics = [#tpu.dimension_semantics<parallel>], iteration_bounds = array<i64: 2>, scalar_prefetch = 0 : i64, scratch_operands = 1 : i64, tpu.core_type = #tpu.core_type<tc>, window_params = [{transform_indices = @transform_0, window_bounds = array<i64: 1, 4, 256>}, {pipeline_mode = #tpu.pipeline_mode<synchronous>, transform_indices = @transform_1, window_bounds = array<i64: 8, 4>}, {pipeline_mode = #tpu.pipeline_mode<synchronous>, transform_indices = @transform_2, window_bounds = array<i64: 8, 1>}, {pipeline_mode = #tpu.pipeline_mode<synchronous>, transform_indices = @transform_3, window_bounds = array<i64: 2, 8>}, {pipeline_mode = #tpu.pipeline_mode<synchronous>, transform_indices = @transform_4, window_bounds = array<i64: 8, 2>}, {pipeline_mode = #tpu.pipeline_mode<synchronous>, transform_indices = @transform_5, window_bounds = array<i64: 9, 8, 8>}, {pipeline_mode = #tpu.pipeline_mode<synchronous>, transform_indices = @transform_6, window_bounds = array<i64: 8, 1>}, {pipeline_mode = #tpu.pipeline_mode<synchronous>, transform_indices = @transform_7, window_bounds = array<i64: 2, 256>}, {transform_indices = @transform_8, window_bounds = array<i64: 1, 8, 256>}]} {
    %c0 = arith.constant 0 : index
    %c0_0 = arith.constant 0 : index
    %c0_1 = arith.constant 0 : index
    %0 = vector.load %arg1[%c0, %c0_0, %c0_1] : memref<1x4x256xf32, #tpu.memory_space<vmem>>, vector<1x4x256xf32>
    %1 = vector.shape_cast %0 : vector<1x4x256xf32> to vector<4x256xf32>
    %c0_2 = arith.constant 0 : index
    %c0_3 = arith.constant 0 : index
    %2 = vector.load %arg2[%c0_2, %c0_3] : memref<8x4xf32, #tpu.memory_space<vmem>>, vector<8x4xf32>
    %cst = arith.constant dense<0.000000e+00> : vector<8x256xf32>
    %3 = tpu.matmul %2, %1, %cst {dimension_numbers = #tpu.dot_dimension_numbers<[1], [0], [0], [1], [0, 0, 1, 1], [], []>} : vector<8x4xf32>, vector<4x256xf32>, vector<8x256xf32> -> vector<8x256xf32>
    %c0_4 = arith.constant 0 : index
    %c0_5 = arith.constant 0 : index
    %4 = vector.load %arg3[%c0_4, %c0_5] : memref<8x1xf32, #tpu.memory_space<vmem>>, vector<8x1xf32>
    %5 = vector.broadcast %4 : vector<8x1xf32> to vector<8x256xf32>
    %6 = arith.addf %3, %5 : vector<8x256xf32>
    %cst_6 = arith.constant 0.000000e+00 : f32
    %7 = vector.broadcast %cst_6 : f32 to vector<8x256xf32>
    %8 = arith.maximumf %6, %7 : vector<8x256xf32>
    %cst_7 = arith.constant dense<0.000000e+00> : vector<8xf32>
    %9 = vector.multi_reduction <add>, %8, %cst_7 [1] : vector<8x256xf32> to vector<8xf32>
    %10 = vector.shape_cast %9 : vector<8xf32> to vector<8x1xf32>
    %cst_8 = arith.constant 3.906250e-03 : f32
    %11 = vector.broadcast %cst_8 : f32 to vector<8x1xf32>
    %12 = arith.mulf %10, %11 : vector<8x1xf32>
    %c0_9 = arith.constant 0 : index
    %c0_10 = arith.constant 0 : index
    %13 = vector.load %arg4[%c0_9, %c0_10] : memref<2x8xf32, #tpu.memory_space<vmem>>, vector<2x8xf32>
    %cst_11 = arith.constant dense<0.000000e+00> : vector<2x1xf32>
    %14 = tpu.matmul %13, %12, %cst_11 {dimension_numbers = #tpu.dot_dimension_numbers<[1], [0], [0], [1], [0, 0, 1, 1], [], []>} : vector<2x8xf32>, vector<8x1xf32>, vector<2x1xf32> -> vector<2x1xf32>
    %cst_12 = arith.constant 0.000000e+00 : f32
    %15 = vector.broadcast %cst_12 : f32 to vector<2x1xf32>
    %16 = arith.maximumf %14, %15 : vector<2x1xf32>
    %c0_13 = arith.constant 0 : index
    %c0_14 = arith.constant 0 : index
    %17 = vector.load %arg5[%c0_13, %c0_14] : memref<8x2xf32, #tpu.memory_space<vmem>>, vector<8x2xf32>
    %cst_15 = arith.constant dense<0.000000e+00> : vector<8x1xf32>
    %18 = tpu.matmul %17, %16, %cst_15 {dimension_numbers = #tpu.dot_dimension_numbers<[1], [0], [0], [1], [0, 0, 1, 1], [], []>} : vector<8x2xf32>, vector<2x1xf32>, vector<8x1xf32> -> vector<8x1xf32>
    %cst_16 = arith.constant 0.000000e+00 : f32
    %19 = vector.broadcast %cst_16 : f32 to vector<8x1xf32>
    %20 = arith.subf %19, %18 : vector<8x1xf32>
    %21 = math.exp %20 : vector<8x1xf32>
    %cst_17 = arith.constant 1.000000e+00 : f32
    %22 = vector.broadcast %cst_17 : f32 to vector<8x1xf32>
    %23 = arith.addf %22, %21 : vector<8x1xf32>
    %cst_18 = arith.constant 1.000000e+00 : f32
    %24 = vector.broadcast %cst_18 : f32 to vector<8x1xf32>
    %25 = arith.divf %24, %23 : vector<8x1xf32>
    %cst_19 = arith.constant 0.000000e+00 : f32
    %26 = vector.broadcast %cst_19 : f32 to vector<8x128xf32>
    %c0_20 = arith.constant 0 : index
    %c0_21 = arith.constant 0 : index
    %27 = vector.load %arg10[%c0_20, %c0_21] : memref<8x512xf32, #tpu.memory_space<vmem>>, vector<8x128xf32>
    tpu.vector_store %arg10[%c0_20, %c0_21], %26 {strides = array<i32>} : memref<8x512xf32, #tpu.memory_space<vmem>>, vector<8x128xf32>,
    %cst_22 = arith.constant 0.000000e+00 : f32
    %28 = vector.broadcast %cst_22 : f32 to vector<8x128xf32>
    %c0_23 = arith.constant 0 : index
    %c384 = arith.constant 384 : index
    %29 = vector.load %arg10[%c0_23, %c384] : memref<8x512xf32, #tpu.memory_space<vmem>>, vector<8x128xf32>
    tpu.vector_store %arg10[%c0_23, %c384], %28 {strides = array<i32>} : memref<8x512xf32, #tpu.memory_space<vmem>>, vector<8x128xf32>,
    %30 = vector.broadcast %25 : vector<8x1xf32> to vector<8x256xf32>
    %31 = arith.mulf %8, %30 : vector<8x256xf32>
    %c0_24 = arith.constant 0 : index
    %c128 = arith.constant 128 : index
    %32 = vector.load %arg10[%c0_24, %c128] : memref<8x512xf32, #tpu.memory_space<vmem>>, vector<8x256xf32>
    tpu.vector_store %arg10[%c0_24, %c128], %31 {strides = array<i32>} : memref<8x512xf32, #tpu.memory_space<vmem>>, vector<8x256xf32>,
    %c0_25 = arith.constant 0 : index
    %c0_26 = arith.constant 0 : index
    %33 = vector.load %arg8[%c0_25, %c0_26] : memref<2x256xf32, #tpu.memory_space<vmem>>, vector<1x256xf32>
    %c1 = arith.constant 1 : index
    %c0_27 = arith.constant 0 : index
    %34 = vector.load %arg8[%c1, %c0_27] : memref<2x256xf32, #tpu.memory_space<vmem>>, vector<1x256xf32>
    %c0_28 = arith.constant 0 : index
    %c111 = arith.constant 111 : index
    %35 = vector.load %arg10[%c0_28, %c111] : memref<8x512xf32, #tpu.memory_space<vmem>>, vector<8x256xf32>
    %36 = vector.broadcast %33 : vector<1x256xf32> to vector<8x256xf32>
    %37 = arith.mulf %35, %36 : vector<8x256xf32>
    %c0_29 = arith.constant 0 : index
    %c0_30 = arith.constant 0 : index
    %c0_31 = arith.constant 0 : index
    %38 = vector.load %arg6[%c0_29, %c0_30, %c0_31] : memref<9x8x8xf32, #tpu.memory_space<vmem>>, vector<1x8x8xf32>
    %39 = vector.shape_cast %38 : vector<1x8x8xf32> to vector<8x8xf32>
    %cst_32 = arith.constant dense<0.000000e+00> : vector<8x256xf32>
    %40 = tpu.matmul %39, %37, %cst_32 {dimension_numbers = #tpu.dot_dimension_numbers<[1], [0], [0], [1], [0, 0, 1, 1], [], []>} : vector<8x8xf32>, vector<8x256xf32>, vector<8x256xf32> -> vector<8x256xf32>
    %c0_33 = arith.constant 0 : index
    %c112 = arith.constant 112 : index
    %41 = vector.load %arg10[%c0_33, %c112] : memref<8x512xf32, #tpu.memory_space<vmem>>, vector<8x256xf32>
    %c1_34 = arith.constant 1 : index
    %c0_35 = arith.constant 0 : index
    %c0_36 = arith.constant 0 : index
    %42 = vector.load %arg6[%c1_34, %c0_35, %c0_36] : memref<9x8x8xf32, #tpu.memory_space<vmem>>, vector<1x8x8xf32>
    %43 = vector.shape_cast %42 : vector<1x8x8xf32> to vector<8x8xf32>
    %cst_37 = arith.constant dense<0.000000e+00> : vector<8x256xf32>
    %44 = tpu.matmul %43, %41, %cst_37 {dimension_numbers = #tpu.dot_dimension_numbers<[1], [0], [0], [1], [0, 0, 1, 1], [], []>} : vector<8x8xf32>, vector<8x256xf32>, vector<8x256xf32> -> vector<8x256xf32>
    %45 = arith.addf %40, %44 : vector<8x256xf32>
    %c0_38 = arith.constant 0 : index
    %c113 = arith.constant 113 : index
    %46 = vector.load %arg10[%c0_38, %c113] : memref<8x512xf32, #tpu.memory_space<vmem>>, vector<8x256xf32>
    %47 = vector.broadcast %34 : vector<1x256xf32> to vector<8x256xf32>
    %48 = arith.mulf %46, %47 : vector<8x256xf32>
    %c2 = arith.constant 2 : index
    %c0_39 = arith.constant 0 : index
    %c0_40 = arith.constant 0 : index
    %49 = vector.load %arg6[%c2, %c0_39, %c0_40] : memref<9x8x8xf32, #tpu.memory_space<vmem>>, vector<1x8x8xf32>
    %50 = vector.shape_cast %49 : vector<1x8x8xf32> to vector<8x8xf32>
    %cst_41 = arith.constant dense<0.000000e+00> : vector<8x256xf32>
    %51 = tpu.matmul %50, %48, %cst_41 {dimension_numbers = #tpu.dot_dimension_numbers<[1], [0], [0], [1], [0, 0, 1, 1], [], []>} : vector<8x8xf32>, vector<8x256xf32>, vector<8x256xf32> -> vector<8x256xf32>
    %52 = arith.addf %45, %51 : vector<8x256xf32>
    %c0_42 = arith.constant 0 : index
    %c127 = arith.constant 127 : index
    %53 = vector.load %arg10[%c0_42, %c127] : memref<8x512xf32, #tpu.memory_space<vmem>>, vector<8x256xf32>
    %54 = vector.broadcast %33 : vector<1x256xf32> to vector<8x256xf32>
    %55 = arith.mulf %53, %54 : vector<8x256xf32>
    %c3 = arith.constant 3 : index
    %c0_43 = arith.constant 0 : index
    %c0_44 = arith.constant 0 : index
    %56 = vector.load %arg6[%c3, %c0_43, %c0_44] : memref<9x8x8xf32, #tpu.memory_space<vmem>>, vector<1x8x8xf32>
    %57 = vector.shape_cast %56 : vector<1x8x8xf32> to vector<8x8xf32>
    %cst_45 = arith.constant dense<0.000000e+00> : vector<8x256xf32>
    %58 = tpu.matmul %57, %55, %cst_45 {dimension_numbers = #tpu.dot_dimension_numbers<[1], [0], [0], [1], [0, 0, 1, 1], [], []>} : vector<8x8xf32>, vector<8x256xf32>, vector<8x256xf32> -> vector<8x256xf32>
    %59 = arith.addf %52, %58 : vector<8x256xf32>
    %c0_46 = arith.constant 0 : index
    %c128_47 = arith.constant 128 : index
    %60 = vector.load %arg10[%c0_46, %c128_47] : memref<8x512xf32, #tpu.memory_space<vmem>>, vector<8x256xf32>
    %c4 = arith.constant 4 : index
    %c0_48 = arith.constant 0 : index
    %c0_49 = arith.constant 0 : index
    %61 = vector.load %arg6[%c4, %c0_48, %c0_49] : memref<9x8x8xf32, #tpu.memory_space<vmem>>, vector<1x8x8xf32>
    %62 = vector.shape_cast %61 : vector<1x8x8xf32> to vector<8x8xf32>
    %cst_50 = arith.constant dense<0.000000e+00> : vector<8x256xf32>
    %63 = tpu.matmul %62, %60, %cst_50 {dimension_numbers = #tpu.dot_dimension_numbers<[1], [0], [0], [1], [0, 0, 1, 1], [], []>} : vector<8x8xf32>, vector<8x256xf32>, vector<8x256xf32> -> vector<8x256xf32>
    %64 = arith.addf %59, %63 : vector<8x256xf32>
    %c0_51 = arith.constant 0 : index
    %c129 = arith.constant 129 : index
    %65 = vector.load %arg10[%c0_51, %c129] : memref<8x512xf32, #tpu.memory_space<vmem>>, vector<8x256xf32>
    %66 = vector.broadcast %34 : vector<1x256xf32> to vector<8x256xf32>
    %67 = arith.mulf %65, %66 : vector<8x256xf32>
    %c5 = arith.constant 5 : index
    %c0_52 = arith.constant 0 : index
    %c0_53 = arith.constant 0 : index
    %68 = vector.load %arg6[%c5, %c0_52, %c0_53] : memref<9x8x8xf32, #tpu.memory_space<vmem>>, vector<1x8x8xf32>
    %69 = vector.shape_cast %68 : vector<1x8x8xf32> to vector<8x8xf32>
    %cst_54 = arith.constant dense<0.000000e+00> : vector<8x256xf32>
    %70 = tpu.matmul %69, %67, %cst_54 {dimension_numbers = #tpu.dot_dimension_numbers<[1], [0], [0], [1], [0, 0, 1, 1], [], []>} : vector<8x8xf32>, vector<8x256xf32>, vector<8x256xf32> -> vector<8x256xf32>
    %71 = arith.addf %64, %70 : vector<8x256xf32>
    %c0_55 = arith.constant 0 : index
    %c143 = arith.constant 143 : index
    %72 = vector.load %arg10[%c0_55, %c143] : memref<8x512xf32, #tpu.memory_space<vmem>>, vector<8x256xf32>
    %73 = vector.broadcast %33 : vector<1x256xf32> to vector<8x256xf32>
    %74 = arith.mulf %72, %73 : vector<8x256xf32>
    %c6 = arith.constant 6 : index
    %c0_56 = arith.constant 0 : index
    %c0_57 = arith.constant 0 : index
    %75 = vector.load %arg6[%c6, %c0_56, %c0_57] : memref<9x8x8xf32, #tpu.memory_space<vmem>>, vector<1x8x8xf32>
    %76 = vector.shape_cast %75 : vector<1x8x8xf32> to vector<8x8xf32>
    %cst_58 = arith.constant dense<0.000000e+00> : vector<8x256xf32>
    %77 = tpu.matmul %76, %74, %cst_58 {dimension_numbers = #tpu.dot_dimension_numbers<[1], [0], [0], [1], [0, 0, 1, 1], [], []>} : vector<8x8xf32>, vector<8x256xf32>, vector<8x256xf32> -> vector<8x256xf32>
    %78 = arith.addf %71, %77 : vector<8x256xf32>
    %c0_59 = arith.constant 0 : index
    %c144 = arith.constant 144 : index
    %79 = vector.load %arg10[%c0_59, %c144] : memref<8x512xf32, #tpu.memory_space<vmem>>, vector<8x256xf32>
    %c7 = arith.constant 7 : index
    %c0_60 = arith.constant 0 : index
    %c0_61 = arith.constant 0 : index
    %80 = vector.load %arg6[%c7, %c0_60, %c0_61] : memref<9x8x8xf32, #tpu.memory_space<vmem>>, vector<1x8x8xf32>
    %81 = vector.shape_cast %80 : vector<1x8x8xf32> to vector<8x8xf32>
    %cst_62 = arith.constant dense<0.000000e+00> : vector<8x256xf32>
    %82 = tpu.matmul %81, %79, %cst_62 {dimension_numbers = #tpu.dot_dimension_numbers<[1], [0], [0], [1], [0, 0, 1, 1], [], []>} : vector<8x8xf32>, vector<8x256xf32>, vector<8x256xf32> -> vector<8x256xf32>
    %83 = arith.addf %78, %82 : vector<8x256xf32>
    %c0_63 = arith.constant 0 : index
    %c145 = arith.constant 145 : index
    %84 = vector.load %arg10[%c0_63, %c145] : memref<8x512xf32, #tpu.memory_space<vmem>>, vector<8x256xf32>
    %85 = vector.broadcast %34 : vector<1x256xf32> to vector<8x256xf32>
    %86 = arith.mulf %84, %85 : vector<8x256xf32>
    %c8 = arith.constant 8 : index
    %c0_64 = arith.constant 0 : index
    %c0_65 = arith.constant 0 : index
    %87 = vector.load %arg6[%c8, %c0_64, %c0_65] : memref<9x8x8xf32, #tpu.memory_space<vmem>>, vector<1x8x8xf32>
    %88 = vector.shape_cast %87 : vector<1x8x8xf32> to vector<8x8xf32>
    %cst_66 = arith.constant dense<0.000000e+00> : vector<8x256xf32>
    %89 = tpu.matmul %88, %86, %cst_66 {dimension_numbers = #tpu.dot_dimension_numbers<[1], [0], [0], [1], [0, 0, 1, 1], [], []>} : vector<8x8xf32>, vector<8x256xf32>, vector<8x256xf32> -> vector<8x256xf32>
    %90 = arith.addf %83, %89 : vector<8x256xf32>
    %c0_67 = arith.constant 0 : index
    %c128_68 = arith.constant 128 : index
    %91 = vector.load %arg10[%c0_67, %c128_68] : memref<8x512xf32, #tpu.memory_space<vmem>>, vector<8x256xf32>
    %92 = arith.addf %91, %90 : vector<8x256xf32>
    %c0_69 = arith.constant 0 : index
    %c0_70 = arith.constant 0 : index
    %93 = vector.load %arg7[%c0_69, %c0_70] : memref<8x1xf32, #tpu.memory_space<vmem>>, vector<8x1xf32>
    %94 = vector.broadcast %93 : vector<8x1xf32> to vector<8x256xf32>
    %95 = arith.addf %92, %94 : vector<8x256xf32>
    %cst_71 = arith.constant 0.000000e+00 : f32
    %96 = vector.broadcast %cst_71 : f32 to vector<8x256xf32>
    %97 = arith.maximumf %95, %96 : vector<8x256xf32>
    %c0_72 = arith.constant 0 : index
    %c0_73 = arith.constant 0 : index
    %c0_74 = arith.constant 0 : index
    %98 = vector.load %arg9[%c0_72, %c0_73, %c0_74] : memref<1x8x256xf32, #tpu.memory_space<vmem>>, vector<1x8x256xf32>
    %99 = vector.shape_cast %98 : vector<1x8x256xf32> to vector<8x256xf32>
    %100 = vector.shape_cast %97 : vector<8x256xf32> to vector<1x8x256xf32>
    tpu.vector_store %arg9[%c0_72, %c0_73, %c0_74], %100 {strides = array<i32>} : memref<1x8x256xf32, #tpu.memory_space<vmem>>, vector<1x8x256xf32>,
    return
  }
  func.func @transform_0(%arg0: i32) -> (i32, i32, i32) {
    %c0_i32 = arith.constant 0 : i32
    %c0_i32_0 = arith.constant 0 : i32
    %c0_i32_1 = arith.constant 0 : i32
    return %arg0, %c0_i32, %c0_i32_0 : i32, i32, i32
  }
  func.func @transform_1(%arg0: i32) -> (i32, i32) {
    %c0_i32 = arith.constant 0 : i32
    %c0_i32_0 = arith.constant 0 : i32
    %c0_i32_1 = arith.constant 0 : i32
    return %c0_i32, %c0_i32_0 : i32, i32
  }
  func.func @transform_2(%arg0: i32) -> (i32, i32) {
    %c0_i32 = arith.constant 0 : i32
    %c0_i32_0 = arith.constant 0 : i32
    %c0_i32_1 = arith.constant 0 : i32
    return %c0_i32, %c0_i32_0 : i32, i32
  }
  func.func @transform_3(%arg0: i32) -> (i32, i32) {
    %c0_i32 = arith.constant 0 : i32
    %c0_i32_0 = arith.constant 0 : i32
    %c0_i32_1 = arith.constant 0 : i32
    return %c0_i32, %c0_i32_0 : i32, i32
  }
  func.func @transform_4(%arg0: i32) -> (i32, i32) {
    %c0_i32 = arith.constant 0 : i32
    %c0_i32_0 = arith.constant 0 : i32
    %c0_i32_1 = arith.constant 0 : i32
    return %c0_i32, %c0_i32_0 : i32, i32
  }
  func.func @transform_5(%arg0: i32) -> (i32, i32, i32) {
    %c0_i32 = arith.constant 0 : i32
    %c0_i32_0 = arith.constant 0 : i32
    %c0_i32_1 = arith.constant 0 : i32
    %c0_i32_2 = arith.constant 0 : i32
    return %c0_i32, %c0_i32_0, %c0_i32_1 : i32, i32, i32
  }
  func.func @transform_6(%arg0: i32) -> (i32, i32) {
    %c0_i32 = arith.constant 0 : i32
    %c0_i32_0 = arith.constant 0 : i32
    %c0_i32_1 = arith.constant 0 : i32
    return %c0_i32, %c0_i32_0 : i32, i32
  }
  func.func @transform_7(%arg0: i32) -> (i32, i32) {
    %c0_i32 = arith.constant 0 : i32
    %c0_i32_0 = arith.constant 0 : i32
    %c0_i32_1 = arith.constant 0 : i32
    return %c0_i32, %c0_i32_0 : i32, i32
  }
  func.func @transform_8(%arg0: i32) -> (i32, i32, i32) {
    %c0_i32 = arith.constant 0 : i32
    %c0_i32_0 = arith.constant 0 : i32
    %c0_i32_1 = arith.constant 0 : i32
    return %arg0, %c0_i32, %c0_i32_0 : i32, i32, i32
  }
}

</mosaic_0001>

<bundles_post_ra>
// kernel: tpu_custom_call.1
= control target key start
LH: loop header
LB: loop body
LE: loop exit
PB: predicated region body
PF: predicated region fallthrough
CT: control target
= control target key end

     0   :  { %13 = vsyncpa [#allocation4], 0  ;;  %s1653_s0 = inlined_call_operand.vmem [shape: f32[2,4,256], index: 0, kind: input, shape index: {}]   ;;  %s1654_s1 = inlined_call_operand.vmem [shape: f32[8,4], index: 1, kind: input, shape index: {}]   ;;  %s1655_s2 = inlined_call_operand.vmem [shape: f32[8,1], index: 2, kind: input, shape index: {}]   ;;  %s1656_s3 = inlined_call_operand.vmem [shape: f32[2,8], index: 3, kind: input, shape index: {}]   ;;  %s1657_s4 = inlined_call_operand.vmem [shape: f32[8,2], index: 4, kind: input, shape index: {}]   ;;  %s1658_s5 = inlined_call_operand.vmem [shape: f32[9,8,8], index: 5, kind: input, shape index: {}]   ;;  %s1659_s6 = inlined_call_operand.vmem [shape: f32[8,1], index: 6, kind: input, shape index: {}]   ;;  %s1660_s7 = inlined_call_operand.vmem [shape: f32[2,256], index: 7, kind: input, shape index: {}]   ;;  %s1661_s8 = inlined_call_operand.hbm [shape: f32[2,8,256], index: 8, kind: output, shape index: {}]  }
   0x1   :  { %15 = vsyncpa [#allocation4 + $0x1], 0  ;;  %s1419_s27 = smov 0   ;;  %s1421_s28 = smov 0  }
   0x2   :  { %s1423_s29 = smov 0   ;;  %s1425_s30 = smov 0  }
   0x3 LB: > { %s1440_s9 = sadd.s32 4294967295, %s1362_s30   ;;  %s1157_s10 = sadd.s32 4294967294, %s1362_s30   ;;  %s1362_s30 = sphi %s1425_s30, %s1667_s30   ;;  %s1358_s29 = sphi %s1423_s29, %s1666_s29   ;;  %s1354_s28 = sphi %s1421_s28, %s1665_s28   ;;  %s1350_s27 = sphi %s1419_s27, %s1664_s27  }
   0x4   : > { %s1444_s11 = sadd.s32 1, %s1362_s30   ;;  %s201_s12 = sadd.s32 1, %s1358_s29 }
   0x5   : > { %s198_s13 = ssub.s32 %s1362_s30, %s1444_s11  ;;  %p211_p0 = scmp.ne.s32.totalorder %s1358_s29, %s1354_s28 }
   0x6   : > { %p199_p1 = scmp.eq.s32.totalorder %s198_s13, 0  ;;  %p212_p2 = scmp.eq.s32.totalorder %s1440_s9, 1 }
   0x7   : > { %p217_p3 = scmp.ne.s32.totalorder %s1354_s28, %s1350_s27  ;;  %p218_p4 = scmp.eq.s32.totalorder %s1157_s10, 1 }
   0x8   : > { %s1455_s14 = scalar_select %p199_p1, %s1358_s29, %s201_s12  }
   0x9   : > { %p1457_p5 = por %p212_p2, %p211_p0  ;;  %p1461_p6 = por %p218_p4, %p217_p3 }
   0xa   : > { %p1160_p7 = scmp.ge.s32.totalorder %s1362_s30, 1  ;;  %p265_p8 = scmp.lt.s32.totalorder %s1362_s30, 3 }
   0xc   : > { %p266_p9 = pnand %p1160_p7, %p265_p8 }
   0xd   : > { %p299_p10 = scmp.lt.s32.totalorder (!%p266_p9), %s1440_s9, 1  ;;  %s1366_s22 = smov (!%p266_p9), 113  }
   0xe   : > { %269 = sbr.rel (%p266_p9) target bundleno = 996 (0x3e4), region = 52  ;;  %s1368_s24 = smov (!%p266_p9), 1  }
   0xf   : > { %s1369_s25 = smov (!%p266_p9), 15   ;;  %s1370_s26 = smov (!%p266_p9), 17  }
  0x10   : > { %s1371_s10 = smov (!%p266_p9), 16   ;;  %s1373_s12 = smov (!%p266_p9), 112  }
  0x13   : > { %v306_v0 = vld [vmem:[%s1655_s2] sm:$0xff]  ;;  %v1364_v1 = vmov 0   ;;  %s300_s19 = scalar_select %p299_p10, %s1440_s9, 1  ;;  %vm320_vm0 = vcmask 1043456   ;;  %vm316_vm1 = vcmask 31744   ;;  %vm372_vm2 = vcmask 64512  }
  0x14   : > { %1254 = vset.pattern.permute.xlu0 %v1364_v1  ;;  %1255 = vset.pattern.permute.xlu1 %v1364_v1  ;;  %v305_v3 = vld [vmem:[%s1654_s1] sm:$0xff]  ;;  %vm402_vm3 = vcmask 1041408   ;;  %vm398_vm4 = vcmask 15360   ;;  %vm469_vm9 = vcmask 908288   ;;  %v1372_v50 = vmov 0.0  }
  0x15   : > { %309 = vperm.xlu0 %1254, %v306_v0   ;;  %s1203_s20 = sshll.u32 %s300_s19, 3  ;;  %v371_v16 = vld [vmem:[%s1656_s3] sm:$0x3]  ;;  %s1365_s19 = smov 111   ;;  %vm601_vm10 = vcmask 924672   ;;  %vm674_vm11 = vcmask 1039360  }
  0x16   : > { %s303_s23 = scalar_lea.vmem %s1653_s0, %s1203_s20  ;;  %v397_v19 = vld [vmem:[%s1657_s4] sm:$0xff]  ;;  %vm693_vm12 = vcmask 7168   ;;  %vm620_vm13 = vcmask 121856   ;;  %vm546_vm14 = vcmask 138240   ;;  %vm489_vm15 = vcmask 130048  }
  0x17   : > { %v304_v2 = vld [vmem:[%s303_s23] sm:$0xff]  ;;  %s1367_s23 = smov 127  }
  0x18   : > { %313 = vst [vmem:[#allocation1] ss:$2 sm:$0xff] %v304_v2  ;;  %v456_v20 = vld [vmem:[%s1660_s7] ss:$2 sm:$0x3] }
  0x19   : > { %v463_v21 = vperm.slane %v456_v20, 0  ;;  %v464_v22 = vperm.slane %v456_v20, 1  ;;  %v1171_v23 = vld [vmem:[%s1660_s7 + $0x1] ss:$2 sm:$0x3] }
  0x1a   : > { %v596_v24 = vperm.slane %v1171_v23, 1  ;;  %v595_v25 = vperm.slane %v1171_v23, 0 }
  0x1b   : > { %465 = vrot.lane.b32.xlu1 %v463_v21, %s1365_s19  ;;  %467 = vrot.lane.b32.xlu2 %v464_v22, %s1365_s19 }
  0x1f   : > { %v314_v4 = vld.sshfl [vmem:[#allocation1] sm:$0xff pattern:$0x75316420]  ;;  %v315_v5 = vld.sshfl [vmem:[#allocation1 + $0x8] sm:$0xff pattern:$0x75316420] }
  0x20   : > { %1164 = vmatpush.msk.msra.mxu0 %vm320_vm0, %v314_v4  ;;  %1166 = vmatpush.msk.msra.mxu1 %vm320_vm0, %v315_v5  ;;  %vm946_vm0 = vcmask 916480  }
  0x21   : > { %1165 = vmatmul.msk.f32.vlgmr.msra.gmra.mxu0 %vm316_vm1, %v305_v3  ;;  %1167 = vmatmul.msk.f32.vlgmr.msra.gmra.mxu1 %vm316_vm1, %v305_v3 }
  0x23   : > { %599 = vrot.lane.b32.xlu1 %v596_v24, %s1366_s22  ;;  %597 = vrot.lane.b32.xlu2 %v595_v25, %s1366_s22 }
  0x2b   : > { %670 = vrot.lane.b32.xlu2 %v463_v21, %s1367_s23 }
  0x33   : > { %793 = vrot.lane.b32.xlu2 %v595_v25, %s1368_s24 }
  0x3b   : > { %864 = vrot.lane.b32.xlu2 %v463_v21, %s1369_s25 }
  0x43   : > { %996 = vrot.lane.b32.xlu2 %v595_v25, %s1370_s26  ;;  %v1069_v25 = vld [vmem:[%s1659_s6] sm:$0xff] }
  0x75   : > { %v468_v42 = vpop.permute.xlu2 %467 }
  0x7d   : > { %v598_v44 = vpop.permute.xlu2 %597 }
  0x7e   : > { %v606_v58 = vmul.f32 0.0, %v598_v44 }
  0x85   : > { %v671_v53 = vpop.permute.xlu2 %670 }
  0x86   : > { %v679_v55 = vmul.f32 0.0, %v671_v53 }
  0x87   : > { %v310_v6 = vpop.permute.xlu0 %309 }
  0x8d   : > { %v466_v41 = vpop.permute.xlu1 %465  ;;  %v794_v1 = vpop.permute.xlu2 %793 }
  0x8e   : > { %v470_v48 = vsel %vm469_vm9, %v466_v41, %v468_v42  ;;  %v474_v49 = vmul.f32 0.0, %v466_v41 }
  0x95   : > { %v600_v43 = vpop.permute.xlu1 %599 }
  0x96   : > { %v602_v56 = vsel %vm601_vm10, %v598_v44, %v600_v43 }
  0x9e   : > { %v342_v7 = vpop.f32.mrf.mxu0  ;;  %v362_v8 = vpop.f32.mrf.mxu1 }
  0x9f   : > { %v1478_v9 = vadd.f32 %v342_v7, %v310_v6  ;;  %v1480_v10 = vadd.f32 %v362_v8, %v310_v6  ;;  %v865_v8 = vpop.permute.xlu2 %864 }
  0xa1   : > { %v365_v11 = vmax.f32 %v1478_v9, 0.0  ;;  %v366_v12 = vmax.f32 %v1480_v10, 0.0 }
  0xa3   : > { %v367_v13 = vadd.f32 %v366_v12, %v365_v11 }
  0xa5   : > { %368 = vadd.xlane.f32.xlu0 %v367_v13 }
 0x118   : > { %v369_v14 = vpop.xlane.xlu0 %368 }
 0x119   : > { %v370_v15 = vmul.f32 0.00390625, %v369_v14 }
 0x11b   : > { %391 = vmatpush.msra.mxu2 %v370_v15 }
 0x11c   : > { %1168 = vmatmul.msk.f32.vlgmr.msra.gmra.mxu2 %vm372_vm2, %v371_v16 }
 0x19f   : > { %v393_v17 = vpop.f32.mrf.mxu2 }
 0x1a0   : > { %v396_v18 = vmax.f32 %v393_v17, 0.0 }
 0x1a2   : > { %1169 = vmatpush.msk.msra.mxu3 %vm402_vm3, %v396_v18 }
 0x1a3   : > { %1170 = vmatmul.msk.f32.vlgmr.msra.gmra.mxu3 %vm398_vm4, %v397_v19  ;;  %v997_v19 = vpop.permute.xlu2 %996 }
 0x226   : > { %v423_v26 = vpop.f32.mrf.mxu3 }
 0x227   : > { %v426_v27 = vsub.f32 0.0, %v423_v26 }
 0x229   : > { %v427_v28 = vmul.f32 1.442695, %v426_v27 }
 0x22b   : > { %1296 = vpow2.f32 %v427_v28 }
 0x231   : > { %v1297_v29 = vpop.eup %1296 }
 0x232   : > { %v429_v30 = vadd.f32 1.0, %v1297_v29  ;;  %v1172_v29 = vld [vmem:[%s1658_s5 + $0x8] sm:$0xff] }
 0x234   : > { %1298 = vrcp.f32 %v429_v30  ;;  %v441_v34 = vand.u32 2147483648, %v429_v30  ;;  %v439_v36 = vand.u32 2147483647, %v429_v30  ;;  %vm435_vm6 = vweird.f32 %v429_v30 }
 0x236   : > { %v442_v38 = vor.u32 1.1754944e-38, %v441_v34  ;;  %vm440_vm8 = vcmp.eq.f32.partialorder %v439_v36, 8.507059e+37 }
 0x23a   : > { %v1299_v31 = vpop.eup %1298 }
 0x23b   : > { %v431_v32 = vmul.f32 %v1299_v31, %v429_v30  ;;  %vm436_vm5 = vweird.f32 %v1299_v31 }
 0x23c   : > { %vm437_vm7 = vmor %vm435_vm6, %vm436_vm5 }
 0x23d   : > { %v432_v33 = vsub.f32 1.0, %v431_v32 }
 0x23f   : > { %v433_v35 = vmul.f32 %v1299_v31, %v432_v33 }
 0x241   : > { %v434_v37 = vadd.f32 %v1299_v31, %v433_v35 }
 0x243   : > { %v438_v39 = vsel %vm437_vm7, %v1299_v31, %v434_v37 }
 0x244   : > { %v443_v40 = vsel %vm440_vm8, %v442_v38, %v438_v39  ;;  %v477_v39 = vld [vmem:[%s1658_s5] sm:$0xff] }
 0x245   : > { %449 = vperm.xlu1 %1255, %v443_v40  }
 0x24d   : > { %672 = vrot.lane.b32.xlu1 %v464_v22, %s1367_s23 }
 0x255   : > { %795 = vrot.lane.b32.xlu1 %v596_v24, %s1368_s24 }
 0x25d   : > { %866 = vrot.lane.b32.xlu1 %v464_v22, %s1369_s25 }
 0x265   : > { %998 = vrot.lane.b32.xlu1 %v596_v24, %s1370_s26 }
 0x2b7   : > { %v450_v45 = vpop.permute.xlu1 %449 }
 0x2b8   : > { %v1515_v46 = vmul.f32 %v450_v45, %v365_v11  ;;  %v1519_v47 = vmul.f32 %v450_v45, %v366_v12 }
 0x2ba   : > { %487 = vrot.lane.b32.xlu0 %v1519_v47, %s1371_s10  ;;  %v1256_v51 = vpack.i.bf16 %v1515_v46, %v1372_v50  ;;  %v475_v52 = vmul.f32 %v470_v48, %v1515_v46  ;;  %v607_v60 = vmul.f32 %v602_v56, %v1515_v46  ;;  %v476_v62 = vmul.f32 %v468_v42, %v1519_v47  ;;  %v1180_v56 = vld [vmem:[%s1658_s5 + $0x18] sm:$0xff] }
 0x2bb   : > { %v608_v3 = vmul.f32 %v600_v43, %v1519_v47  ;;  %v801_v11 = vmul.f32 %v794_v1, %v1515_v46  ;;  %v872_v13 = vmul.f32 %v865_v8, %v1515_v46  ;;  %v1281_v15 = vpack.i.bf16 %v1519_v47, %v1515_v46 }
 0x2bc   : > { %1257 = vrot.lane.b32.xlu2 %v1256_v51, %s1371_s10  ;;  %v1261_v54 = vpack.i.bf16 %v475_v52, %v474_v49  ;;  %v1266_v0 = vpack.i.bf16 %v607_v60, %v606_v58  ;;  %v1004_v23 = vmul.f32 %v997_v19, %v1515_v46 }
 0x2be   : > { %1262 = vrot.lane.b32.xlu1 %v1261_v54, %s1370_s26 }
 0x2bf   : > { %v673_v57 = vpop.permute.xlu1 %672 }
 0x2c0   : > { %v675_v59 = vsel %vm674_vm11, %v671_v53, %v673_v57  ;;  %v681_v6 = vmul.f32 %v673_v57, %v1519_v47  ;;  %v1177_v53 = vld [vmem:[%s1658_s5 + $0x10] sm:$0xff] }
 0x2c1   : > { %v680_v61 = vmul.f32 %v675_v59, %v1515_v46 }
 0x2c3   : > { %v1271_v63 = vpack.i.bf16 %v680_v61, %v679_v55 }
 0x2c4   : > { %544 = vrot.lane.b32.xlu2 %v476_v62, %s1370_s26  ;;  %v1183_v62 = vld [vmem:[%s1658_s5 + $0x20] sm:$0xff] }
 0x2c5   : > { %1272 = vrot.lane.b32.xlu0 %v1271_v63, %s1368_s24 }
 0x2c6   : > { %1267 = vrot.lane.b32.xlu1 %v1266_v0, %s1369_s25  ;;  %v1186_v0 = vld [vmem:[%s1658_s5 + $0x28] sm:$0xff] }
 0x2c7   : > { %v796_v2 = vpop.permute.xlu1 %795 }
 0x2c8   : > { %v797_v4 = vsel %vm693_vm12, %v794_v1, %v796_v2  ;;  %v803_v5 = vmul.f32 0.0, %v796_v2 }
 0x2c9   : > { %v802_v7 = vmul.f32 %v797_v4, %v1519_v47 }
 0x2cb   : > { %v1276_v14 = vpack.i.bf16 %v802_v7, %v801_v11  ;;  %v1189_v11 = vld [vmem:[%s1658_s5 + $0x30] sm:$0xff] }
 0x2cc   : > { %618 = vrot.lane.b32.xlu2 %v608_v3, %s1369_s25  ;;  %s1204_s25 = sshll.u32 %s1440_s9, 4 }
 0x2cd   : > { %813 = vrot.lane.b32.xlu0 %v803_v5, %s1367_s23 }
 0x2ce   : > { %691 = vrot.lane.b32.xlu1 %v681_v6, %s1368_s24 }
 0x2cf   : > { %v867_v9 = vpop.permute.xlu1 %866 }
 0x2d0   : > { %v868_v10 = vsel %vm620_vm13, %v865_v8, %v867_v9  ;;  %v874_v20 = vmul.f32 0.0, %v867_v9 }
 0x2d1   : > { %v873_v12 = vmul.f32 %v868_v10, %v1519_v47 }
 0x2d3   : > { %v1286_v16 = vpack.i.bf16 %v873_v12, %v872_v13 }
 0x2d4   : > { %1277 = vrot.lane.b32.xlu2 %v1276_v14, %s1367_s23  ;;  %v1192_v14 = vld [vmem:[%s1658_s5 + $0x38] sm:$0xff]  ;;  %s296_s23 = sand.u32 1, %s1354_s28  }
 0x2d5   : > { %1282 = vrot.lane.b32.xlu0 %v1281_v15, %s1373_s12  ;;  %s1161_s24 = sshll.u32 %s296_s23, 4  ;;  %s1082_s9 = scalar_lea.sflag [#allocation4], %s296_s23 }
 0x2d6   : > { %1287 = vrot.lane.b32.xlu1 %v1286_v16, %s1366_s22  ;;  %s298_s13 = scalar_lea.vmem [#allocation3], %s1161_s24  ;;  %s1320_s24 = scalar_lea.hbm %s1661_s8, 32 }
 0x2d7   : > { %v999_v17 = vpop.permute.xlu1 %998  ;;  %s1095_s17 = sshll.u32 %s298_s13, 4  ;;  %s1096_s17 = int_to_ptr.vmem [resolvable:$true] %s1095_s17 }
 0x2d8   : > { %v1006_v18 = vmul.f32 0.0, %v999_v17  ;;  %v1000_v21 = vsel %vm546_vm14, %v997_v19, %v999_v17 }
 0x2d9   : > { %v1005_v22 = vmul.f32 %v1000_v21, %v1519_v47 }
 0x2db   : > { %v1291_v24 = vpack.i.bf16 %v1005_v22, %v1004_v23 }
 0x2dc   : > { %884 = vrot.lane.b32.xlu2 %v874_v20, %s1366_s22  ;;  %v1195_v20 = vld [vmem:[%s1658_s5 + $0x40] sm:$0xff] }
 0x2dd   : > { %1016 = vrot.lane.b32.xlu0 %v1006_v18, %s1365_s19 }
 0x2de   : > { %944 = vrot.lane.b32.xlu1 %v1372_v50, %s1373_s12  ;;  %s1093_s12 = scalar_lea.hbm %s1661_s8, %s1204_s25 }
 0x2df   : > { %s1097_s18 = sshll.u32 %s1093_s12, 4  ;;  %s1098_s18 = int_to_ptr.hbm [resolvable:$true] %s1097_s18 }
 0x2e0   : > { %s1314_s20 = sshra.s32 %s1098_s18, 4  ;;  %s1315_s20 = int_to_ptr.hbm [resolvable:$true] %s1314_s20 }
 0x2e1   : > { %p1321_p0 = scmp.lt.s32.totalorder %s1315_s20, %s1661_s8 }
 0x2e4   : > { %1292 = vrot.lane.b32.xlu2 %v1291_v24, %s1365_s19  ;;  %s1316_s19 = scalar_lea.hbm %s1315_s20, 16 }
 0x2e5   : > { %p1317_p11 = scmp.ne.s32.totalorder %s1315_s20, %s1316_s19  ;;  %p1322_p1 = scmp.lt.s32.totalorder %s1320_s24, %s1316_s19 }
 0x2e6   : > { %1072 = vperm.xlu1 %1255, %v1069_v25  }
 0x2e7   : > { %p1318_p12 = pnand %p1317_p11, %p1457_p5  ;;  %p1323_p2 = por %p1322_p1, %p1321_p0 }
 0x2e9   : > { %p1319_p13 = pneg %p1318_p12 }
 0x2eb   : > { %p1324_p3 = pnand %p1323_p2, %p1319_p13 }
 0x316   : > { %v1258_v26 = vpop.permute.xlu2 %1257 }
 0x317   : > { %v1260_v27 = vunpack.i.h.bf16 %v1258_v26  ;;  %v1259_v28 = vunpack.i.l.bf16 %v1258_v26 }
 0x319   : > { %v490_v30 = vsel %vm489_vm15, %v1259_v28, %v1260_v27 }
 0x31a   : > { %512 = vmatpush.msrb.mxu0 %v490_v30 }
 0x31b   : > { %1173 = vmatmul.msk.f32.vlgmr.msrb.gmra.mxu0 %vm372_vm2, %v1172_v29 }
 0x31e   : > { %v545_v31 = vpop.permute.xlu2 %544 }
 0x326   : > { %v619_v32 = vpop.permute.xlu2 %618 }
 0x32c   : > { %v488_v33 = vpop.permute.xlu0 %487 }
 0x32d   : > { %v491_v34 = vsel %vm489_vm15, %v1260_v27, %v488_v33 }
 0x32e   : > { %532 = vmatpush.msrb.mxu1 %v491_v34  ;;  %v1278_v38 = vpop.permute.xlu2 %1277 }
 0x32f   : > { %1174 = vmatmul.msk.f32.vlgmr.msrb.gmra.mxu1 %vm372_vm2, %v1172_v29  ;;  %v1280_v43 = vunpack.i.h.bf16 %v1278_v38  ;;  %v1279_v44 = vunpack.i.l.bf16 %v1278_v38 }
 0x330   : > { %v1263_v35 = vpop.permute.xlu1 %1262 }
 0x331   : > { %v1265_v36 = vunpack.i.h.bf16 %v1263_v35  ;;  %v1264_v37 = vunpack.i.l.bf16 %v1263_v35  ;;  %v815_v58 = vsel %vm674_vm11, %v1279_v44, %v1280_v43 }
 0x333   : > { %v547_v40 = vsel %vm546_vm14, %v1264_v37, %v1265_v36  ;;  %v548_v41 = vsel %vm546_vm14, %v1265_v36, %v545_v31 }
 0x334   : > { %569 = vmatpush.msrb.mxu2 %v547_v40  ;;  %589 = vmatpush.msrb.mxu3 %v548_v41 }
 0x335   : > { %1175 = vmatmul.msk.f32.vlgmr.msrb.gmra.mxu2 %vm372_vm2, %v477_v39  ;;  %1176 = vmatmul.msk.f32.vlgmr.msrb.gmra.mxu3 %vm372_vm2, %v477_v39 }
 0x336   : > { %v885_v57 = vpop.permute.xlu2 %884 }
 0x337   : > { %v1273_v42 = vpop.permute.xlu0 %1272 }
 0x338   : > { %v1275_v45 = vunpack.i.h.bf16 %v1273_v42  ;;  %v1274_v48 = vunpack.i.l.bf16 %v1273_v42  ;;  %v1268_v49 = vpop.permute.xlu1 %1267 }
 0x339   : > { %v1270_v50 = vunpack.i.h.bf16 %v1268_v49  ;;  %v1269_v51 = vunpack.i.l.bf16 %v1268_v49 }
 0x33a   : > { %v694_v52 = vsel %vm693_vm12, %v1274_v48, %v1275_v45 }
 0x33b   : > { %716 = vmatpush.msra.mxu2 %v694_v52  ;;  %v621_v54 = vsel %vm620_vm13, %v1269_v51, %v1270_v50  ;;  %v622_v55 = vsel %vm620_vm13, %v1270_v50, %v619_v32 }
 0x33c   : > { %643 = vmatpush.msra.mxu0 %v621_v54  ;;  %663 = vmatpush.msra.mxu1 %v622_v55 }
 0x33d   : > { %837 = vmatpush.msrb.mxu2 %v815_v58  ;;  %1178 = vmatmul.msk.f32.vlgmr.msra.gmra.mxu0 %vm372_vm2, %v1177_v53 }
 0x33e   : > { %1181 = vmatmul.msk.f32.vlgmr.msra.gmra.mxu2 %vm372_vm2, %v1180_v56  ;;  %763 = vmatpush.msrb.mxu0 %v1515_v46  ;;  %v1293_v1 = vpop.permute.xlu2 %1292 }
 0x33f   : > { %783 = vmatpush.msrb.mxu1 %v1519_v47  ;;  %v814_v59 = vpop.permute.xlu0 %813  ;;  %v1295_v6 = vunpack.i.h.bf16 %v1293_v1  ;;  %v1294_v7 = vunpack.i.l.bf16 %v1293_v1 }
 0x340   : > { %v692_v60 = vpop.permute.xlu1 %691  ;;  %1179 = vmatmul.msk.f32.vlgmr.msra.gmra.mxu1 %vm372_vm2, %v1177_v53  ;;  %v816_v63 = vsel %vm674_vm11, %v1280_v43, %v814_v59 }
 0x341   : > { %v695_v61 = vsel %vm693_vm12, %v1275_v45, %v692_v60  ;;  %v1018_v15 = vsel %vm469_vm9, %v1294_v7, %v1295_v6 }
 0x342   : > { %736 = vmatpush.msra.mxu3 %v695_v61 }
 0x343   : > { %1182 = vmatmul.msk.f32.vlgmr.msra.gmra.mxu3 %vm372_vm2, %v1180_v56 }
 0x344   : > { %857 = vmatpush.msrb.mxu3 %v816_v63 }
 0x345   : > { %1184 = vmatmul.msk.f32.vlgmr.msrb.gmra.mxu0 %vm372_vm2, %v1183_v62 }
 0x346   : > { %1187 = vmatmul.msk.f32.vlgmr.msrb.gmra.mxu2 %vm372_vm2, %v1186_v0 }
 0x347   : > { %v1283_v2 = vpop.permute.xlu0 %1282 }
 0x348   : > { %v1285_v3 = vunpack.i.h.bf16 %v1283_v2  ;;  %v1284_v4 = vunpack.i.l.bf16 %v1283_v2  ;;  %v1288_v5 = vpop.permute.xlu1 %1287  ;;  %1185 = vmatmul.msk.f32.vlgmr.msrb.gmra.mxu1 %vm372_vm2, %v1183_v62 }
 0x349   : > { %v1290_v8 = vunpack.i.h.bf16 %v1288_v5  ;;  %v1289_v9 = vunpack.i.l.bf16 %v1288_v5 }
 0x34a   : > { %v947_v10 = vsel %vm946_vm0, %v1284_v4, %v1285_v3 }
 0x34b   : > { %1188 = vmatmul.msk.f32.vlgmr.msrb.gmra.mxu3 %vm372_vm2, %v1186_v0  ;;  %969 = vmatpush.msra.mxu2 %v947_v10  ;;  %v886_v12 = vsel %vm601_vm10, %v1289_v9, %v1290_v8  ;;  %v887_v13 = vsel %vm601_vm10, %v1290_v8, %v885_v57 }
 0x34c   : > { %908 = vmatpush.msra.mxu0 %v886_v12  ;;  %928 = vmatpush.msra.mxu1 %v887_v13 }
 0x34d   : > { %1190 = vmatmul.msk.f32.vlgmr.msra.gmra.mxu0 %vm372_vm2, %v1189_v11 }
 0x34e   : > { %1193 = vmatmul.msk.f32.vlgmr.msra.gmra.mxu2 %vm372_vm2, %v1192_v14  ;;  %1040 = vmatpush.msrb.mxu0 %v1018_v15 }
 0x34f   : > { %v1017_v16 = vpop.permute.xlu0 %1016 }
 0x350   : > { %v1019_v17 = vsel %vm469_vm9, %v1295_v6, %v1017_v16  ;;  %v945_v18 = vpop.permute.xlu1 %944  ;;  %1191 = vmatmul.msk.f32.vlgmr.msra.gmra.mxu1 %vm372_vm2, %v1189_v11 }
 0x351   : > { %v948_v19 = vsel %vm946_vm0, %v1285_v3, %v945_v18  ;;  %1060 = vmatpush.msrb.mxu1 %v1019_v17 }
 0x352   : > { %989 = vmatpush.msra.mxu3 %v948_v19 }
 0x353   : > { %1194 = vmatmul.msk.f32.vlgmr.msra.gmra.mxu3 %vm372_vm2, %v1192_v14 }
 0x355   : > { %1196 = vmatmul.msk.f32.vlgmr.msrb.gmra.mxu0 %vm372_vm2, %v1195_v20 }
 0x358   : > { %1197 = vmatmul.msk.f32.vlgmr.msrb.gmra.mxu1 %vm372_vm2, %v1195_v20  ;;  %v1073_v56 = vpop.permute.xlu1 %1072 }
 0x398   : > { %v514_v21 = vpop.f32.mrf.mxu0 }
 0x3ac   : > { %v534_v22 = vpop.f32.mrf.mxu1 }
 0x3b8   : > { %v571_v23 = vpop.f32.mrf.mxu2  ;;  %v591_v26 = vpop.f32.mrf.mxu3 }
 0x3b9   : > { %v572_v27 = vadd.f32 %v571_v23, %v514_v21  ;;  %v592_v31 = vadd.f32 %v591_v26, %v534_v22 }
 0x3ba   : > { %v645_v24 = vpop.f32.mrf.mxu0 }
 0x3bb   : > { %v668_v30 = vadd.f32 %v645_v24, %v572_v27 }
 0x3bd   : > { %v665_v25 = vpop.f32.mrf.mxu1 }
 0x3be   : > { %v669_v35 = vadd.f32 %v665_v25, %v592_v31 }
 0x3c1   : > { %v718_v28 = vpop.f32.mrf.mxu2 }
 0x3c2   : > { %v765_v29 = vpop.f32.mrf.mxu0  ;;  %v741_v33 = vadd.f32 %v718_v28, %v668_v30 }
 0x3c4   : > { %v788_v37 = vadd.f32 %v765_v29, %v741_v33 }
 0x3c5   : > { %v785_v32 = vpop.f32.mrf.mxu1 }
 0x3c6   : > { %v738_v34 = vpop.f32.mrf.mxu3 }
 0x3c7   : > { %v742_v39 = vadd.f32 %v738_v34, %v669_v35 }
 0x3c9   : > { %v839_v36 = vpop.f32.mrf.mxu2  ;;  %v789_v43 = vadd.f32 %v785_v32, %v742_v39 }
 0x3ca   : > { %v910_v38 = vpop.f32.mrf.mxu0  ;;  %v862_v40 = vadd.f32 %v839_v36, %v788_v37 }
 0x3cc   : > { %v933_v44 = vadd.f32 %v910_v38, %v862_v40 }
 0x3cd   : > { %v930_v41 = vpop.f32.mrf.mxu1 }
 0x3ce   : > { %v859_v42 = vpop.f32.mrf.mxu3 }
 0x3cf   : > { %v863_v45 = vadd.f32 %v859_v42, %v789_v43 }
 0x3d1   : > { %v971_v48 = vpop.f32.mrf.mxu2  ;;  %v934_v52 = vadd.f32 %v930_v41, %v863_v45 }
 0x3d2   : > { %v994_v49 = vadd.f32 %v971_v48, %v933_v44  ;;  %v1042_v50 = vpop.f32.mrf.mxu0 }
 0x3d4   : > { %v1065_v51 = vadd.f32 %v1042_v50, %v994_v49 }
 0x3d5   : > { %v1062_v55 = vpop.f32.mrf.mxu1 }
 0x3d6   : > { %v1067_v53 = vadd.f32 %v1065_v51, %v1515_v46  ;;  %v991_v54 = vpop.f32.mrf.mxu3 }
 0x3d7   : > { %v995_v57 = vadd.f32 %v991_v54, %v934_v52 }
 0x3d8   : > { %v1075_v58 = vadd.f32 %v1073_v56, %v1067_v53 }
 0x3d9   : > { %v1066_v59 = vadd.f32 %v1062_v55, %v995_v57 }
 0x3da   : > { %v1077_v60 = vmax.f32 %v1075_v58, 0.0 }
 0x3db   : > { %v1068_v61 = vadd.f32 %v1066_v59, %v1519_v47 }
 0x3dc   : > { %1079 = vst [vmem:[%s298_s13] sm:$0xff] %v1077_v60 }
 0x3dd   : > { %v1076_v46 = vadd.f32 %v1073_v56, %v1068_v61 }
 0x3df   : > { %v1078_v62 = vmax.f32 %v1076_v46, 0.0 }
 0x3e1   : > { %1080 = vst [vmem:[%s298_s13 + $0x8] sm:$0xff] %v1078_v62 }
 0x3e2   : > { %1327 = shalt.err (!%p1324_p3)
}
 0x3e3   : > { %1205 = dma.vmem_to_hbm [thread:$0]  (%p1457_p5), %s1096_s17, 256, %s1098_s18, %s1082_s9  }
 0x3e4 PF: > { %p1211_p4 = scmp.ge.s32.totalorder %s1362_s30, 2  ;;  %s1109_s23 = sand.u32 1, %s1350_s27  }
 0x3e5   : > { %s1110_s10 = scalar_lea.sflag [#allocation4], %s1109_s23 }
 0x3e6   : > { %p1208_p7 = pnand %p1211_p4, %p1461_p6 }
 0x3e8   : > { %p1209_p8 = pneg %p1208_p7 }
 0x3ea   : > { %1345 = dma.done.wait (%p1209_p8), %s1110_s10, 256  }
 0x3eb   : > { %1347 = vsyncadd (%p1209_p8), %s1110_s10, 4294967040  ;;  %p18_p9 = scmp.ge.s32.totalorder %s1444_s11, 4   ;;  %s1664_s27 = smov %s1354_s28 }
 0x3ec   : > { %s1665_s28 = smov %s1358_s29  ;;  %s1666_s29 = smov %s1455_s14 }
 0x3ed   : > { %s1667_s30 = smov %s1444_s11  ;;  %20 = sbr.rel (!%p18_p9) target bundleno = 3 (0x3), region = 96 }
 0x3f2   :  { %1116 = vsyncpa [#allocation4], 1 }
 0x3f3   :  { %1118 = vsyncpa [#allocation4 + $0x1], 1 }

</bundles_post_ra>
